<compile_context>
chip_gen: v5e
topology: v5e:2x2
jax: 0.10.0
libtpu: 0.0.40
codegen_flags: <defaults>
</compile_context>

<pallas_src>
import functools
import math

import jax
import jax.numpy as jnp
from jax.experimental import pallas as pl
from jax.experimental.pallas import tpu as pltpu

PI = 3.1415927410125732          # same constant as the PyTorch module
BIT = 3
U = 1.0 / 2 ** BIT               # u = 0.125
LAMBD = 0.01

_LANES = 128
_SUBLANES = 8
_MAX_BLOCK_ROWS = 2048           # 2048*128*f32 = 1 MiB per pipeline buffer
_MAX_OUTER = 8                   # leading "parallel" grid axis (megacore/v7x)


def _cos_loss_kernel(x_ref, out_ref, acc_ref, *, u, block_rows, n_inner,
                     n_full_blocks, rem):
    """Elementwise cos((2*pi/u)**(x - u/2)) + 1, tree-accumulated.

    Grid is (outer=parallel, inner=arbitrary).  acc_ref is a single-vreg
    (8,128) per-outer-slice accumulator; out_ref gets one (1,128) partial-sum
    row per outer slice.
    """
    o = pl.program_id(0)
    i = pl.program_id(1)

    @pl.when(i == 0)
    def _():
        acc_ref[...] = jnp.zeros_like(acc_ref)

    block_id = o * n_inner + i                  # which data block this step is

    base = 2.0 * PI / u                         # > 0
    log2_base = math.log2(base)
    half_u = u / 2.0

    def _tile_value():
        x = x_ref[...]                          # (block_rows, 128) f32
        # torch.pow(base, y) with float base > 0  ==  exp2(y * log2(base));
        # exp2 is the native EUP primitive (no extra rescale like exp).
        powed = jnp.exp2((x - half_u) * jnp.float32(log2_base))
        return jnp.cos(powed) + 1.0

    def _accumulate(v):
        # Single-vreg accumulator: per-tile tree reduce instead of a full-tile
        # read-modify-write.  Reshape cuts exactly on (8,128) vreg boundaries.
        acc_ref[...] += jnp.sum(
            v.reshape(block_rows // _SUBLANES, _SUBLANES, _LANES), axis=0)

    # Hot path: tile is entirely real data — no mask work at all.
    @pl.when(block_id < n_full_blocks)
    def _():
        _accumulate(_tile_value())

    # Boundary tile (at most one in the whole grid): mask the padded tail.
    if rem > 0:
        @pl.when(block_id == n_full_blocks)
        def _():
            v = _tile_value()
            row = jax.lax.broadcasted_iota(jnp.int32, v.shape, 0)
            col = jax.lax.broadcasted_iota(jnp.int32, v.shape, 1)
            within = row * _LANES + col         # < block_elems <= 2^18: no overflow
            _accumulate(jnp.where(within < rem, v, 0.0))

    # Fully padded tiles (block_id past the data) fall through: no compute.

    @pl.when(i == pl.num_programs(1) - 1)
    def _():
        # One tiny reduce per outer slice; output stays lane-dense (1, 128).
        out_ref[...] = jnp.sum(acc_ref[...], axis=0, keepdims=True)


def cos_loss(params, u=U, lambd=LAMBD):
    """Pallas implementation of Cos_Loss.forward(net, u) over a list of params."""
    # TODO(synk): this concat+pad writes a full HBM copy that the kernel then
    # re-reads (~3x traffic for huge nets); replace with in-place per-param
    # reads via a scalar-prefetched offset table + manual DMA gather.
    flat = jnp.concatenate([jnp.ravel(p).astype(jnp.float32) for p in params])
    n = int(flat.shape[0])

    # Largest tile that makes sense, but capped so that nets with >= 2 tiles'
    # worth of rows produce >= 2 blocks (v7x: one per TensorCore).
    rows_needed = -(-n // _LANES)
    rows_8 = ((rows_needed + _SUBLANES - 1) // _SUBLANES) * _SUBLANES
    block_rows = min(_MAX_BLOCK_ROWS, rows_8)
    if rows_8 >= 2 * _SUBLANES:
        half = ((rows_8 // 2 + _SUBLANES - 1) // _SUBLANES) * _SUBLANES
        block_rows = min(block_rows, half)
    block_elems = block_rows * _LANES

    num_blocks = -(-n // block_elems)           # blocks holding real data
    n_full_blocks = n // block_elems            # blocks with no padding
    rem = n - n_full_blocks * block_elems       # real elems in boundary block

    # Split blocks over (parallel outer, arbitrary inner); pick the outer
    # extent minimizing padded blocks, preferring more parallelism on ties.
    n_outer, n_inner, best_waste = 1, num_blocks, None
    for cand in range(1, min(_MAX_OUTER, num_blocks) + 1):
        inner = -(-num_blocks // cand)
        waste = cand * inner - num_blocks
        if (best_waste is None or waste < best_waste
                or (waste == best_waste and cand > n_outer)):
            n_outer, n_inner, best_waste = cand, inner, waste

    total_blocks = n_outer * n_inner
    padded_elems = total_blocks * block_elems

    flat = jnp.pad(flat, (0, padded_elems - n))
    x2d = flat.reshape(total_blocks * block_rows, _LANES)   # lane-dense

    kernel = functools.partial(
        _cos_loss_kernel, u=u, block_rows=block_rows, n_inner=n_inner,
        n_full_blocks=n_full_blocks, rem=rem)

    partials = pl.pallas_call(
        kernel,
        out_shape=jax.ShapeDtypeStruct((n_outer, _LANES), jnp.float32),
        grid_spec=pltpu.PrefetchScalarGridSpec(
            num_scalar_prefetch=0,
            grid=(n_outer, n_inner),
            in_specs=[
                pl.BlockSpec((block_rows, _LANES),
                             lambda o, i: (o * n_inner + i, 0)),
            ],
            out_specs=pl.BlockSpec((1, _LANES), lambda o, i: (o, 0)),
            scratch_shapes=[pltpu.VMEM((_SUBLANES, _LANES), jnp.float32)],
        ),
        compiler_params=pltpu.CompilerParams(
            dimension_semantics=("parallel", "arbitrary"),
        ),
        cost_estimate=pl.CostEstimate(
            flops=4 * num_blocks * block_elems,
            transcendentals=2 * num_blocks * block_elems,    # exp2 + cos
            bytes_accessed=4 * padded_elems + 4 * n_outer * _LANES,
        ),
    )(x2d)

    return jnp.sum(partials) * jnp.float32(lambd)


def _reference_cos_loss(params, u=U, lambd=LAMBD):
    base = 2.0 * PI / u
    total = 0.0
    for p in params:
        p = p.astype(jnp.float32)
        total = total + jnp.sum(jnp.cos(jnp.power(base, p - u / 2.0)) + 1.0)
    return total * lambd


if __name__ == "__main__":
    # Deterministic synthetic "net" parameters (small conv + linear layers).
    key = jax.random.PRNGKey(0)
    k0, k1, k2, k3, k4 = jax.random.split(key, 5)
    params_small = [
        0.1 * jax.random.normal(k0, (4, 4, 3, 3), dtype=jnp.float32),  # conv w
        0.1 * jax.random.normal(k1, (4,), dtype=jnp.float32),          # conv b
        0.1 * jax.random.normal(k2, (16, 32), dtype=jnp.float32),      # fc w
        0.1 * jax.random.normal(k3, (16,), dtype=jnp.float32),         # fc b
    ]

    loss = jax.block_until_ready(cos_loss(params_small, U, LAMBD))
    ref = jax.block_until_ready(_reference_cos_loss(params_small, U, LAMBD))
    assert jnp.allclose(loss, ref, rtol=1e-4, atol=1e-4), (loss, ref)

    # A moderate extra weight to exercise the multi-block grid, the parallel
    # outer axis, the tail-only masking path and the padded-tile skip.
    params_big = params_small + [
        0.1 * jax.random.normal(k4, (320, 1024), dtype=jnp.float32),
    ]
    loss2 = jax.block_until_ready(cos_loss(params_big, U, LAMBD))
    ref2 = jax.block_until_ready(_reference_cos_loss(params_big, U, LAMBD))
    assert jnp.allclose(loss2, ref2, rtol=1e-3, atol=1e-2), (loss2, ref2)

    print("KERNEL_OK")
</pallas_src>

<mosaic_0001>
module attributes {stable_mosaic.version = 11 : i64} {
  func.func @_cos_loss_kernel(%arg0: i32, %arg1: i32, %arg2: memref<8x128xf32, #tpu.memory_space<vmem>>, %arg3: memref<1x128xf32, #tpu.memory_space<vmem>>, %arg4: memref<8x128xf32, #tpu.memory_space<vmem>>) attributes {dimension_semantics = [#tpu.dimension_semantics<parallel>, #tpu.dimension_semantics<arbitrary>], iteration_bounds = array<i64: 1, 1>, scalar_prefetch = 0 : i64, scratch_operands = 1 : i64, tpu.core_type = #tpu.core_type<tc>, window_params = [{transform_indices = @transform_0, window_bounds = array<i64: 8, 128>}, {transform_indices = @transform_1, window_bounds = array<i64: 1, 128>}]} {
    %c0_i32 = arith.constant 0 : i32
    %0 = arith.cmpi eq, %arg1, %c0_i32 : i32
    %1 = arith.extui %0 : i1 to i32
    %c0_i32_0 = arith.constant 0 : i32
    %2 = arith.cmpi ne, %1, %c0_i32_0 : i32
    scf.if %2 {
      %cst = arith.constant 0.000000e+00 : f32
      %14 = vector.broadcast %cst : f32 to vector<8x128xf32>
      %c0 = arith.constant 0 : index
      %c0_7 = arith.constant 0 : index
      %15 = vector.load %arg4[%c0, %c0_7] : memref<8x128xf32, #tpu.memory_space<vmem>>, vector<8x128xf32>
      tpu.vector_store %arg4[%c0, %c0_7], %14 {strides = array<i32>} : memref<8x128xf32, #tpu.memory_space<vmem>>, vector<8x128xf32>,
    } else {
    }
    %c1_i32 = arith.constant 1 : i32
    %3 = arith.muli %arg0, %c1_i32 : i32
    %4 = arith.addi %3, %arg1 : i32
    %c0_i32_1 = arith.constant 0 : i32
    %5 = arith.cmpi slt, %4, %c0_i32_1 : i32
    %6 = arith.extui %5 : i1 to i32
    %c0_i32_2 = arith.constant 0 : i32
    %7 = arith.cmpi ne, %6, %c0_i32_2 : i32
    scf.if %7 {
      %c0 = arith.constant 0 : index
      %c0_7 = arith.constant 0 : index
      %14 = vector.load %arg2[%c0, %c0_7] : memref<8x128xf32, #tpu.memory_space<vmem>>, vector<8x128xf32>
      %cst = arith.constant 6.250000e-02 : f32
      %15 = vector.broadcast %cst : f32 to vector<8x128xf32>
      %16 = arith.subf %14, %15 : vector<8x128xf32>
      %cst_8 = arith.constant 5.65149593 : f32
      %17 = vector.broadcast %cst_8 : f32 to vector<8x128xf32>
      %18 = arith.mulf %16, %17 : vector<8x128xf32>
      %19 = math.exp2 %18 : vector<8x128xf32>
      %20 = math.cos %19 : vector<8x128xf32>
      %cst_9 = arith.constant 1.000000e+00 : f32
      %21 = vector.broadcast %cst_9 : f32 to vector<8x128xf32>
      %22 = arith.addf %20, %21 : vector<8x128xf32>
      %c0_10 = arith.constant 0 : index
      %c0_11 = arith.constant 0 : index
      %23 = vector.load %arg4[%c0_10, %c0_11] : memref<8x128xf32, #tpu.memory_space<vmem>>, vector<8x128xf32>
      %24 = vector.shape_cast %22 : vector<8x128xf32> to vector<1x8x128xf32>
      %cst_12 = arith.constant dense<0.000000e+00> : vector<8x128xf32>
      %25 = vector.multi_reduction <add>, %24, %cst_12 [0] : vector<1x8x128xf32> to vector<8x128xf32>
      %26 = arith.addf %23, %25 : vector<8x128xf32>
      %c0_13 = arith.constant 0 : index
      %c0_14 = arith.constant 0 : index
      %27 = vector.load %arg4[%c0_13, %c0_14] : memref<8x128xf32, #tpu.memory_space<vmem>>, vector<8x128xf32>
      tpu.vector_store %arg4[%c0_13, %c0_14], %26 {strides = array<i32>} : memref<8x128xf32, #tpu.memory_space<vmem>>, vector<8x128xf32>,
    } else {
    }
    %c0_i32_3 = arith.constant 0 : i32
    %8 = arith.cmpi eq, %4, %c0_i32_3 : i32
    %9 = arith.extui %8 : i1 to i32
    %c0_i32_4 = arith.constant 0 : i32
    %10 = arith.cmpi ne, %9, %c0_i32_4 : i32
    scf.if %10 {
      %c0 = arith.constant 0 : index
      %c0_7 = arith.constant 0 : index
      %14 = vector.load %arg2[%c0, %c0_7] : memref<8x128xf32, #tpu.memory_space<vmem>>, vector<8x128xf32>
      %cst = arith.constant 6.250000e-02 : f32
      %15 = vector.broadcast %cst : f32 to vector<8x128xf32>
      %16 = arith.subf %14, %15 : vector<8x128xf32>
      %cst_8 = arith.constant 5.65149593 : f32
      %17 = vector.broadcast %cst_8 : f32 to vector<8x128xf32>
      %18 = arith.mulf %16, %17 : vector<8x128xf32>
      %19 = math.exp2 %18 : vector<8x128xf32>
      %20 = math.cos %19 : vector<8x128xf32>
      %cst_9 = arith.constant 1.000000e+00 : f32
      %21 = vector.broadcast %cst_9 : f32 to vector<8x128xf32>
      %22 = arith.addf %20, %21 : vector<8x128xf32>
      %23 = tpu.iota {dimensions = array<i32: 0>} : vector<8x128xi32>
      %24 = tpu.iota {dimensions = array<i32: 1>} : vector<8x128xi32>
      %c128_i32 = arith.constant 128 : i32
      %25 = vector.broadcast %c128_i32 : i32 to vector<8x128xi32>
      %26 = arith.muli %23, %25 : vector<8x128xi32>
      %27 = arith.addi %26, %24 : vector<8x128xi32>
      %c676_i32 = arith.constant 676 : i32
      %28 = vector.broadcast %c676_i32 : i32 to vector<8x128xi32>
      %29 = arith.cmpi slt, %27, %28 : vector<8x128xi32>
      %cst_10 = arith.constant 0.000000e+00 : f32
      %30 = vector.broadcast %cst_10 : f32 to vector<8x128xf32>
      %31 = arith.select %29, %22, %30 : vector<8x128xi1>, vector<8x128xf32>
      %c0_11 = arith.constant 0 : index
      %c0_12 = arith.constant 0 : index
      %32 = vector.load %arg4[%c0_11, %c0_12] : memref<8x128xf32, #tpu.memory_space<vmem>>, vector<8x128xf32>
      %33 = vector.shape_cast %31 : vector<8x128xf32> to vector<1x8x128xf32>
      %cst_13 = arith.constant dense<0.000000e+00> : vector<8x128xf32>
      %34 = vector.multi_reduction <add>, %33, %cst_13 [0] : vector<1x8x128xf32> to vector<8x128xf32>
      %35 = arith.addf %32, %34 : vector<8x128xf32>
      %c0_14 = arith.constant 0 : index
      %c0_15 = arith.constant 0 : index
      %36 = vector.load %arg4[%c0_14, %c0_15] : memref<8x128xf32, #tpu.memory_space<vmem>>, vector<8x128xf32>
      tpu.vector_store %arg4[%c0_14, %c0_15], %35 {strides = array<i32>} : memref<8x128xf32, #tpu.memory_space<vmem>>, vector<8x128xf32>,
    } else {
    }
    %c0_i32_5 = arith.constant 0 : i32
    %11 = arith.cmpi eq, %arg1, %c0_i32_5 : i32
    %12 = arith.extui %11 : i1 to i32
    %c0_i32_6 = arith.constant 0 : i32
    %13 = arith.cmpi ne, %12, %c0_i32_6 : i32
    scf.if %13 {
      %c0 = arith.constant 0 : index
      %c0_7 = arith.constant 0 : index
      %14 = vector.load %arg4[%c0, %c0_7] : memref<8x128xf32, #tpu.memory_space<vmem>>, vector<8x128xf32>
      %cst = arith.constant dense<0.000000e+00> : vector<128xf32>
      %15 = vector.multi_reduction <add>, %14, %cst [0] : vector<8x128xf32> to vector<128xf32>
      %16 = vector.shape_cast %15 : vector<128xf32> to vector<1x128xf32>
      %c0_8 = arith.constant 0 : index
      %c0_9 = arith.constant 0 : index
      %17 = vector.load %arg3[%c0_8, %c0_9] : memref<1x128xf32, #tpu.memory_space<vmem>>, vector<1x128xf32>
      tpu.vector_store %arg3[%c0_8, %c0_9], %16 {strides = array<i32>} : memref<1x128xf32, #tpu.memory_space<vmem>>, vector<1x128xf32>,
    } else {
    }
    return
  }
  func.func @transform_0(%arg0: i32, %arg1: i32) -> (i32, i32) {
    %c1_i32 = arith.constant 1 : i32
    %0 = arith.muli %arg0, %c1_i32 : i32
    %1 = arith.addi %0, %arg1 : i32
    %c0_i32 = arith.constant 0 : i32
    %c0_i32_0 = arith.constant 0 : i32
    return %1, %c0_i32 : i32, i32
  }
  func.func @transform_1(%arg0: i32, %arg1: i32) -> (i32, i32) {
    %c0_i32 = arith.constant 0 : i32
    %c0_i32_0 = arith.constant 0 : i32
    return %arg0, %c0_i32 : i32, i32
  }
}

</mosaic_0001>

<bundles_post_ra>
// kernel: tpu_custom_call.1
= control target key start
LH: loop header
LB: loop body
LE: loop exit
PB: predicated region body
PF: predicated region fallthrough
CT: control target
= control target key end

     0   :  { %6 = vsyncpa [#allocation4], 0  ;;  %s553_s0 = inlined_call_operand.hbm [shape: f32[8,128], index: 0, kind: input, shape index: {}]   ;;  %s554_s1 = inlined_call_operand.hbm [shape: f32[1,128], index: 1, kind: output, shape index: {}]  }
   0x1   :  { %7 = vsyncpa [#allocation5], 0  ;;  %s16_s8 = sshll.u32 %s553_s0, 4  ;;  %s474_s9 = smov [#allocation3]   ;;  %s17_s8 = int_to_ptr.hbm [resolvable:$true] %s16_s8 }
   0x2   :  { %s18_s10 = sshll.u32 %s474_s9, 4  ;;  %s19_s10 = int_to_ptr.vmem [resolvable:$true] %s18_s10 }
   0x3   :  { %21 = dma.hbm_to_vmem [thread:$0]  %s17_s8, 128, %s19_s10, [#allocation4]  }
   0x4   :  { %470 = dma.done.wait [#allocation4], 128  }
   0x5   :  { %471 = vsyncadd [#allocation4], 4294967168  ;;  %v204_v0 = vld [vmem:[#allocation3] sm:$0xff]  ;;  %v475_v15 = vmov 683565275   ;;  %s482_s0 = smov [#allocation6]  }
   0x6   :  { %v407_v1 = vadd.f32 -0.0625, %v204_v0  ;;  %v476_v17 = vmov 2475754826   ;;  %v477_v19 = vmov 2131351028   ;;  %s391_s11 = sshll.u32 %s482_s0, 4  ;;  %s392_s11 = int_to_ptr.vmem [resolvable:$true] %s391_s11 }
   0x7   :  { %v478_v21 = vmov 2102212464   ;;  %v479_v23 = vmov 920167782   ;;  %v480_v29 = vmov 1326507024  }
   0x8   :  { %v206_v2 = vmul.f32 5.651496, %v407_v1  ;;  %s393_s14 = sshll.u32 %s554_s1, 4  ;;  %s394_s14 = int_to_ptr.hbm [resolvable:$true] %s393_s14 }
   0xa   :  { %420 = vpow2.f32 %v206_v2 }
  0x10   :  { %v496_v3 = vpop.eup %420 }
  0x11   :  { %v211_v4 = vand.u32 2139095040, %v496_v3  ;;  %v208_v6 = vand.u32 2147483647, %v496_v3  ;;  %vm210_vm12 = vcmp.lt.s32.totalorder %v496_v3, 0 }
  0x13   :  { %v212_v5 = vshrl.u32 %v211_v4, 23  ;;  %v215_v9 = vand.u32 8388607, %v208_v6  ;;  %v481_v4 = vmov 0   ;;  %vm540_vm13 = vcmp.le.f32.partialorder %v208_v6, 0.7853982 }
  0x15   :  { %v408_v7 = vadd.s32 4294967169, %v212_v5  ;;  %v216_v12 = vor.u32 8388608, %v215_v9 }
  0x17   :  { %v218_v8 = vadd.s32 1, %v408_v7  ;;  %v505_v31 = vshll.u32 %v216_v12, 8 }
  0x19   :  { %vm219_vm0 = vcmp.gt.s32.totalorder %v218_v8, 0  ;;  %v257_v43 = vand.u32 65535, %v505_v31  ;;  %v258_v44 = vshrl.u32 %v505_v31, 16 }
  0x1a   :  { %v220_v10 = vsel %vm219_vm0, %v218_v8, 0 }
  0x1b   :  { %v222_v11 = vand.u32 31, %v220_v10  ;;  %v502_v13 = vshrl.u32 %v220_v10, 5 }
  0x1d   :  { %v223_v14 = vsub.s32 32, %v222_v11  ;;  %v225_v16 = vshll.u32 %v475_v15, %v222_v11  ;;  %v228_v18 = vshll.u32 %v476_v17, %v222_v11  ;;  %v231_v20 = vshll.u32 %v477_v19, %v222_v11 }
  0x1e   :  { %v234_v22 = vshll.u32 %v478_v21, %v222_v11  ;;  %v237_v24 = vshll.u32 %v479_v23, %v222_v11  ;;  %vm240_vm1 = vcmp.lt.s32.totalorder %v502_v13, 1  ;;  %vm243_vm2 = vcmp.lt.s32.totalorder %v502_v13, 4 }
  0x1f   :  { %v226_v25 = vshrl.u32 %v476_v17, %v223_v14  ;;  %v229_v26 = vshrl.u32 %v477_v19, %v223_v14  ;;  %v232_v27 = vshrl.u32 %v478_v21, %v223_v14  ;;  %v235_v28 = vshrl.u32 %v479_v23, %v223_v14 }
  0x20   :  { %v238_v30 = vshrl.u32 %v480_v29, %v223_v14  ;;  %vm242_vm3 = vcmp.lt.s32.totalorder %v502_v13, 3  ;;  %vm241_vm4 = vcmp.lt.s32.totalorder %v502_v13, 2  ;;  %v224_v51 = vshrl.u32 %v475_v15, %v223_v14 }
  0x21   :  { %v227_v32 = vor.u32 %v226_v25, %v225_v16  ;;  %v230_v33 = vor.u32 %v229_v26, %v228_v18  ;;  %v233_v34 = vor.u32 %v232_v27, %v231_v20  ;;  %v236_v35 = vor.u32 %v235_v28, %v234_v22 }
  0x22   :  { %v239_v36 = vor.u32 %v238_v30, %v237_v24 }
  0x23   :  { %v248_v37 = vsel %vm240_vm1, %v227_v32, %v230_v33  ;;  %v252_v38 = vsel %vm240_vm1, %v230_v33, %v233_v34  ;;  %v249_v39 = vsel %vm243_vm2, %v236_v35, 920167782  ;;  %v244_v0 = vsel %vm240_vm1, %v224_v51, %v227_v32 }
  0x24   :  { %v253_v40 = vsel %vm243_vm2, %v239_v36, 1326507024  ;;  %v250_v41 = vsel %vm242_vm3, %v233_v34, %v249_v39  ;;  %v245_v2 = vsel %vm243_vm2, %v233_v34, 2102212464  ;;  %vm351_vm1 = vweird.f32 %v496_v3 }
  0x25   :  { %v254_v42 = vsel %vm242_vm3, %v236_v35, %v253_v40  ;;  %v251_v45 = vsel %vm241_vm4, %v248_v37, %v250_v41  ;;  %v246_v15 = vsel %vm242_vm3, %v230_v33, %v245_v2 }
  0x26   :  { %v255_v46 = vsel %vm241_vm4, %v252_v38, %v254_v42  ;;  %v281_v49 = vand.u32 65535, %v251_v45  ;;  %v282_v50 = vshrl.u32 %v251_v45, 16  ;;  %v247_v23 = vsel %vm241_vm4, %v244_v0, %v246_v15 }
  0x27   :  { %v259_v47 = vand.u32 65535, %v255_v46  ;;  %v260_v48 = vshrl.u32 %v255_v46, 16  ;;  %v301_v27 = vmul.u32 %v505_v31, %v247_v23 }
  0x28   :  { %v283_v55 = vmul.u32 %v281_v49, %v257_v43  ;;  %v284_v56 = vmul.u32 %v282_v50, %v257_v43  ;;  %v285_v57 = vmul.u32 %v281_v49, %v258_v44  ;;  %v286_v61 = vmul.u32 %v282_v50, %v258_v44 }
  0x29   :  { %v261_v52 = vmul.u32 %v259_v47, %v257_v43  ;;  %v262_v53 = vmul.u32 %v260_v48, %v257_v43  ;;  %v263_v54 = vmul.u32 %v259_v47, %v258_v44  ;;  %v264_v58 = vmul.u32 %v260_v48, %v258_v44 }
  0x2a   :  { %v287_v62 = vshll.u32 %v284_v56, 16  ;;  %v289_v63 = vshll.u32 %v285_v57, 16  ;;  %v288_v12 = vshrl.u32 %v284_v56, 16  ;;  %v290_v19 = vshrl.u32 %v285_v57, 16 }
  0x2b   :  { %v265_v59 = vshll.u32 %v262_v53, 16  ;;  %v267_v60 = vshll.u32 %v263_v54, 16  ;;  %v266_v8 = vshrl.u32 %v262_v53, 16  ;;  %v268_v16 = vshrl.u32 %v263_v54, 16 }
  0x2c   :  { %vm291_vm6 = vc.u32 %v283_v55, %v287_v62  ;;  %v293_v7 = vadd.s32 %v287_v62, %v283_v55  ;;  %v363_v62 = vlaneseq }
  0x2d   :  { %vm269_vm5 = vc.u32 %v261_v52, %v265_v59  ;;  %v271_v1 = vadd.s32 %v265_v59, %v261_v52  ;;  %v292_v10 = vsel %vm291_vm6, 1, %v481_v4 }
  0x2e   :  { %v270_v5 = vsel %vm269_vm5, 1, %v481_v4  ;;  %v294_v14 = vadd.s32 %v292_v10, %v286_v61  ;;  %vm295_vm8 = vc.u32 %v293_v7, %v289_v63  ;;  %v297_v22 = vadd.s32 %v293_v7, %v289_v63 }
  0x2f   :  { %v272_v9 = vadd.s32 %v270_v5, %v264_v58  ;;  %vm273_vm7 = vc.u32 %v271_v1, %v267_v60  ;;  %v296_v18 = vsel %vm295_vm8, 1, %v481_v4 }
  0x30   :  { %v274_v11 = vsel %vm273_vm7, 1, %v481_v4  ;;  %v298_v20 = vadd.s32 %v296_v18, %v294_v14  ;;  %v364_v4 = vshrl.u32 %v363_v62, 7 }
  0x31   :  { %v276_v17 = vadd.s32 %v274_v11, %v272_v9  ;;  %v366_v11 = vand.u32 127, %v363_v62 }
  0x32   :  { %v299_v24 = vadd.s32 %v298_v20, %v288_v12  ;;  %v367_v12 = vmul.u32 128, %v364_v4 }
  0x33   :  { %v277_v21 = vadd.s32 %v276_v17, %v266_v8 }
  0x34   :  { %v300_v26 = vadd.s32 %v299_v24, %v290_v19  ;;  %v368_v18 = vadd.s32 %v367_v12, %v366_v11 }
  0x35   :  { %v278_v25 = vadd.s32 %v277_v21, %v268_v16 }
  0x36   :  { %v304_v28 = vadd.s32 1, %v300_v26  ;;  %vm369_vm2 = vcmp.lt.s32.totalorder %v368_v18, 676 }
  0x37   :  { %vm303_vm9 = vc.u32 %v278_v25, %v297_v22  ;;  %v302_v13 = vadd.s32 %v297_v22, %v278_v25 }
  0x38   :  { %v305_v29 = vsel %vm303_vm9, %v304_v28, %v300_v26 }
  0x39   :  { %v306_v30 = vadd.s32 %v305_v29, %v301_v27 }
  0x3b   :  { %v307_v32 = vadd.s32 536870912, %v306_v30 }
  0x3d   :  { %v308_v33 = vshrl.u32 %v307_v32, 30 }
  0x3f   :  { %v309_v34 = vshll.u32 %v308_v33, 30  ;;  %v332_v54 = vsub.s32 4, %v308_v33 }
  0x41   :  { %v310_v35 = vsub.s32 %v306_v30, %v309_v34  ;;  %v333_v59 = vsel %vm210_vm12, %v332_v54, %v308_v33 }
  0x42   :  { %v335_v6 = vsel %vm540_vm13, 0, %v333_v59 }
  0x43   :  { %vm311_vm10 = vcmp.lt.s32.totalorder %v310_v35, 0  ;;  %v312_v36 = vsub.s32 0, %v310_v35  ;;  %v352_v5 = vand.u32 3, %v335_v6 }
  0x45   :  { %v313_v37 = vsel %vm311_vm10, %v312_v36, %v310_v35  ;;  %vm357_vm14 = vcmp.eq.s32.totalorder %v352_v5, 2  ;;  %vm354_vm15 = vcmp.eq.s32.totalorder %v352_v5, 0  ;;  %vm353_vm0 = vcmp.lt.s32.totalorder %v352_v5, 2 }
  0x46   :  { %v314_v38 = vclz %v313_v37 }
  0x48   :  { %v409_v39 = vadd.s32 4294967294, %v314_v38 }
  0x4a   :  { %vm410_vm11 = vcmp.lt.s32.totalorder %v409_v39, 0 }
  0x4b   :  { %v317_v40 = vsel %vm410_vm11, 0, %v409_v39 }
  0x4c   :  { %v318_v41 = vsub.s32 32, %v317_v40  ;;  %v319_v42 = vshll.u32 %v310_v35, %v317_v40  ;;  %v322_v43 = vsub.s32 4294967266, %v317_v40 }
  0x4e   :  { %v320_v31 = vshrl.u32 %v302_v13, %v318_v41  ;;  %v323_v44 = vadd.s32 127, %v322_v43 }
  0x50   :  { %v321_v45 = vor.u32 %v320_v31, %v319_v42  ;;  %v324_v46 = vshll.u32 %v323_v44, 23 }
  0x52   :  { %v325_v47 = vor.u32 4788187, %v324_v46  ;;  %v328_v48 = vcvt.s32.f32 %v321_v45 }
  0x54   :  { %v326_v49 = vand.u32 2147483647, %v325_v47 }
  0x56   :  { %v329_v50 = vmul.f32 %v328_v48, %v326_v49 }
  0x58   :  { %v330_v52 = vxor.u32 2147483648, %v329_v50 }
  0x5a   :  { %v331_v53 = vsel %vm210_vm12, %v330_v52, %v329_v50 }
  0x5b   :  { %v334_v55 = vsel %vm540_vm13, %v496_v3, %v331_v53 }
  0x5c   :  { %v336_v56 = vmul.f32 %v334_v55, %v334_v55 }
  0x5e   :  { %v337_v57 = vmul.f32 -0.001358992, %v336_v56  ;;  %v344_v58 = vmul.f32 -0.00019511016, %v336_v56 }
  0x60   :  { %v338_v60 = vadd.f32 0.041655596, %v337_v57  ;;  %v345_v61 = vadd.f32 0.008332121, %v344_v58 }
  0x62   :  { %v339_v63 = vmul.f32 %v338_v60, %v336_v56  ;;  %v346_v0 = vmul.f32 %v345_v61, %v336_v56 }
  0x64   :  { %v340_v1 = vadd.f32 -0.4999988, %v339_v63  ;;  %v347_v2 = vadd.f32 -0.16666654, %v346_v0 }
  0x66   :  { %v341_v7 = vmul.f32 %v340_v1, %v336_v56  ;;  %v348_v8 = vmul.f32 %v347_v2, %v336_v56 }
  0x68   :  { %v342_v9 = vadd.f32 1.0, %v341_v7  ;;  %v349_v10 = vadd.f32 1.0, %v348_v8 }
  0x6a   :  { %v350_v14 = vmul.f32 %v349_v10, %v334_v55  ;;  %v358_v15 = vxor.u32 2147483648, %v342_v9 }
  0x6c   :  { %v355_v16 = vxor.u32 2147483648, %v350_v14  ;;  %v359_v17 = vsel %vm357_vm14, %v358_v15, %v350_v14 }
  0x6e   :  { %v356_v19 = vsel %vm354_vm15, %v342_v9, %v355_v16 }
  0x6f   :  { %v360_v20 = vsel %vm353_vm0, %v356_v19, %v359_v17 }
  0x70   :  { %v361_v21 = vsel %vm351_vm1, nan, %v360_v20 }
  0x71   :  { %v362_v22 = vadd.f32 1.0, %v361_v21 }
  0x73   :  { %v370_v23 = vsel %vm369_vm2, %v362_v22, 0.0 }
  0x74   :  { %v379_v24 = vrot.slane %v370_v23, 4 }
  0x76   :  { %v380_v25 = vadd.f32 %v379_v24, %v370_v23 }
  0x78   :  { %v381_v26 = vrot.slane %v380_v25, 2 }
  0x7a   :  { %v382_v27 = vadd.f32 %v381_v26, %v380_v25 }
  0x7c   :  { %v383_v28 = vrot.slane %v382_v27, 1 }
  0x7e   :  { %v384_v29 = vadd.f32 %v383_v28, %v382_v27 }
  0x80   :  { %385 = vst [vmem:[#allocation6] sm:$0x1] %v384_v29 }
  0x81   :  { %396 = dma.vmem_to_hbm [thread:$0]  %s392_s11, 16, %s394_s14, [#allocation5]  }
  0x82   :  { %472 = dma.done.wait [#allocation5], 16  }
  0x83   :  { %473 = vsyncadd [#allocation5], 4294967280 }
  0x84   :  { %401 = vsyncpa [#allocation4], 1 }
  0x85   :  { %402 = vsyncpa [#allocation5], 1 }

</bundles_post_ra>
